<compile_context>
chip_gen: v6e
topology: v6e:2x2x1
jax: 0.10.0
libtpu: 0.0.40
codegen_flags: <defaults>
</compile_context>

<pallas_src>
import numpy as np
import jax
import jax.numpy as jnp
from jax import lax
from jax.experimental import pallas as pl
from jax.experimental.pallas import tpu as pltpu

BN_EPS = 1e-5


# ---------------------------------------------------------------------------
# Static (data-independent) pooling / interpolation factors.
# ---------------------------------------------------------------------------
def _adaptive_avg_pool_matrix(in_size, out_size):
    """1-D AdaptiveAvgPool as a (out_size, in_size) averaging matrix."""
    P = np.zeros((out_size, in_size), dtype=np.float32)
    for i in range(out_size):
        start = (i * in_size) // out_size
        end = -(-((i + 1) * in_size) // out_size)  # ceil
        P[i, start:end] = 1.0 / (end - start)
    return P


def _bilinear_upsample_matrix(out_size, in_size):
    """1-D bilinear upsample (align_corners=True) as (out_size, in_size)."""
    Q = np.zeros((out_size, in_size), dtype=np.float32)
    for j in range(out_size):
        if in_size == 1:
            Q[j, 0] = 1.0
            continue
        src = 0.0 if out_size == 1 else j * (in_size - 1) / (out_size - 1)
        lo = int(np.floor(src))
        hi = min(lo + 1, in_size - 1)
        w = src - lo
        Q[j, lo] += 1.0 - w
        Q[j, hi] += w
    return Q


def _pyramid_factors(H, W, bin_sizes):
    """Low-rank pool / upsample factors, zero-padded to a common rank Bmax.

    PT[k] : (HW, Bmax)   pooled_k = X(Cin,HW) @ PT[k]          (padded cols = 0)
    QT[k] : (Bmax, HW)   up_k     = small(Cout,Bmax) @ QT[k]   (padded rows = 0)
    Padding is exact: zero PT columns give zero pooled columns, and zero QT
    rows contribute nothing to the upsample.
    """
    K = len(bin_sizes)
    HW = H * W
    Bmax = max(b * b for b in bin_sizes)
    PT = np.zeros((K, HW, Bmax), dtype=np.float32)
    QT = np.zeros((K, Bmax, HW), dtype=np.float32)
    for k, b in enumerate(bin_sizes):
        P2 = np.kron(_adaptive_avg_pool_matrix(H, b),
                     _adaptive_avg_pool_matrix(W, b))          # (b*b, HW)
        Q2 = np.kron(_bilinear_upsample_matrix(H, b),
                     _bilinear_upsample_matrix(W, b))          # (HW, b*b)
        PT[k, :, :b * b] = P2.T
        QT[k, :b * b, :] = Q2.T
    return jnp.asarray(PT), jnp.asarray(QT)


# ---------------------------------------------------------------------------
# Kernel 1: pyramid branches + folded bottleneck, plus BN partial sums.
# Layout: channels on sublanes, HW on lanes (lane-dense stores).
# ---------------------------------------------------------------------------
def _branch_matmul_kernel(x_ref, pt_ref, qt_ref, wraw_ref, wcomb_ref, beff_ref,
                          y_ref, ysum_ref, ysq_ref):
    x = x_ref[0]                                                    # (Cin, HW)
    # raw-x slice of the bottleneck 1x1 conv
    y = jnp.dot(wraw_ref[...], x, preferred_element_type=jnp.float32)  # (Cout, HW)
    K = pt_ref.shape[0]
    for k in range(K):                       # tiny static unroll over branches
        pooled = jnp.dot(x, pt_ref[k],
                         preferred_element_type=jnp.float32)       # (Cin, B)
        small = jnp.dot(wcomb_ref[k], pooled,
                        preferred_element_type=jnp.float32)        # (Cout, B)
        y = y + jnp.dot(small, qt_ref[k],
                        preferred_element_type=jnp.float32)        # (Cout, HW)
    y = y + beff_ref[...]                    # (Cout, 1) broadcast over lanes
    y_ref[0] = y
    # BatchNorm partials (per sample); finished with a tiny JAX reduction.
    ysum_ref[0] = jnp.sum(y, axis=1, keepdims=True)
    ysq_ref[0] = jnp.sum(y * y, axis=1, keepdims=True)


# ---------------------------------------------------------------------------
# Kernel 2: fused BatchNorm(train stats, pre-folded scale/shift) + ReLU.
# ---------------------------------------------------------------------------
def _bn_relu_kernel(y_ref, scale_ref, shift_ref, o_ref):
    o_ref[0] = jnp.maximum(y_ref[0] * scale_ref[...] + shift_ref[...], 0.0)


# ---------------------------------------------------------------------------
# Wrapper.
# ---------------------------------------------------------------------------
def pyramid_parser_forward(x_nchw, params, bin_sizes,
                           compute_dtype=jnp.float32):
    # compute_dtype=jnp.bfloat16 halves HBM/VMEM traffic on v6e/v7x (dots
    # still accumulate in f32); default f32 keeps bit-tight correctness here.
    N, Cin, H, W = x_nchw.shape
    HW = H * W
    K = len(bin_sizes)
    Cout = params["wbot"].shape[-1]

    # NCHW -> (N, Cin, HW): channels on sublanes, HW on lanes. Free reshape.
    x = x_nchw.reshape(N, Cin, HW).astype(compute_dtype)

    PT, QT = _pyramid_factors(H, W, bin_sizes)
    PT = PT.astype(compute_dtype)
    QT = QT.astype(compute_dtype)
    Bmax = PT.shape[-1]

    # Fold per-branch conv into the bottleneck slice of that branch:
    #   interp(pool(x) @ wbr + bbr) @ wbot_k
    #     = Q (P x) (wbr @ wbot_k) + 1 (bbr @ wbot_k)
    wbr, bbr = params["wbr"], params["bbr"]            # (K,Cin,Cin), (K,1,Cin)
    wbot, bbot = params["wbot"], params["bbot"]        # (K+1,Cin,Cout), (1,Cout)
    wcombT = jnp.einsum("kio,koc->kci", wbr, wbot[:K]).astype(compute_dtype)
    wrawT = wbot[K].T.astype(compute_dtype)                       # (Cout, Cin)
    beff = (bbot[0] + jnp.einsum("ki,kic->c", bbr[:, 0, :], wbot[:K]))
    beff = beff.reshape(Cout, 1).astype(jnp.float32)

    const3 = lambda n: (0, 0, 0)
    const2 = lambda n: (0, 0)

    y, ysum, ysq = pl.pallas_call(
        _branch_matmul_kernel,
        grid=(N,),
        in_specs=[
            pl.BlockSpec((1, Cin, HW), lambda n: (n, 0, 0)),
            pl.BlockSpec((K, HW, Bmax), const3),
            pl.BlockSpec((K, Bmax, HW), const3),
            pl.BlockSpec((Cout, Cin), const2),
            pl.BlockSpec((K, Cout, Cin), const3),
            pl.BlockSpec((Cout, 1), const2),
        ],
        out_specs=(
            pl.BlockSpec((1, Cout, HW), lambda n: (n, 0, 0)),
            pl.BlockSpec((1, Cout, 1), lambda n: (n, 0, 0)),
            pl.BlockSpec((1, Cout, 1), lambda n: (n, 0, 0)),
        ),
        out_shape=(
            jax.ShapeDtypeStruct((N, Cout, HW), jnp.float32),
            jax.ShapeDtypeStruct((N, Cout, 1), jnp.float32),
            jax.ShapeDtypeStruct((N, Cout, 1), jnp.float32),
        ),
        compiler_params=pltpu.CompilerParams(
            dimension_semantics=("parallel",)),
    )(x, PT, QT, wrawT, wcombT, beff)

    # Finish BatchNorm (training-mode biased batch statistics) -> scale/shift.
    total = N * HW
    mean = jnp.sum(ysum, axis=0)[:, 0] / total                    # (Cout,)
    ex2 = jnp.sum(ysq, axis=0)[:, 0] / total
    var = ex2 - mean * mean
    gamma = params["gamma"][0]
    beta = params["beta"][0]
    scale = (gamma * lax.rsqrt(var + BN_EPS)).reshape(Cout, 1)
    shift = (beta - mean * scale[:, 0]).reshape(Cout, 1)

    out = pl.pallas_call(
        _bn_relu_kernel,
        grid=(N,),
        in_specs=[
            pl.BlockSpec((1, Cout, HW), lambda n: (n, 0, 0)),
            pl.BlockSpec((Cout, 1), const2),
            pl.BlockSpec((Cout, 1), const2),
        ],
        out_specs=pl.BlockSpec((1, Cout, HW), lambda n: (n, 0, 0)),
        out_shape=jax.ShapeDtypeStruct((N, Cout, HW), jnp.float32),
        compiler_params=pltpu.CompilerParams(
            dimension_semantics=("parallel",)),
    )(y, scale, shift)

    return out.reshape(N, Cout, H, W)                             # NCHW


# ---------------------------------------------------------------------------
# Pure-JAX reference mirroring the PyTorch op order (pool -> conv -> interp
# -> concat -> bottleneck -> BN(train) -> ReLU) for a correctness check.
# ---------------------------------------------------------------------------
def reference_forward(x_nchw, params, bin_sizes):
    N, Cin, H, W = x_nchw.shape
    x = jnp.transpose(x_nchw, (0, 2, 3, 1))                      # (N,H,W,Cin)
    feats = []
    for k, b in enumerate(bin_sizes):
        Ph = jnp.asarray(_adaptive_avg_pool_matrix(H, b))
        Pw = jnp.asarray(_adaptive_avg_pool_matrix(W, b))
        pooled = jnp.einsum("ph,qw,nhwc->npqc", Ph, Pw, x)
        conv = jnp.einsum("npqc,cd->npqd", pooled,
                          params["wbr"][k]) + params["bbr"][k][0]
        Qh = jnp.asarray(_bilinear_upsample_matrix(H, b))
        Qw = jnp.asarray(_bilinear_upsample_matrix(W, b))
        feats.append(jnp.einsum("hp,wq,npqd->nhwd", Qh, Qw, conv))
    feats.append(x)
    cat = jnp.concatenate(feats, axis=-1)
    wbot_full = params["wbot"].reshape(-1, params["wbot"].shape[-1])
    y = jnp.einsum("nhwc,cd->nhwd", cat, wbot_full) + params["bbot"][0]
    mean = jnp.mean(y, axis=(0, 1, 2))
    var = jnp.mean((y - mean) ** 2, axis=(0, 1, 2))
    yn = (y - mean) / jnp.sqrt(var + BN_EPS) * params["gamma"][0] + params["beta"][0]
    return jnp.transpose(jnp.maximum(yn, 0.0), (0, 3, 1, 2))


# ---------------------------------------------------------------------------
def init_params(key, in_features, out_features, bin_sizes):
    K = len(bin_sizes)
    ks = jax.random.split(key, 4)
    return {
        # per-branch 1x1 convs: (K, Cin, Cin) weights, (K, 1, Cin) biases
        "wbr": 0.1 * jax.random.normal(ks[0], (K, in_features, in_features),
                                       jnp.float32),
        "bbr": 0.1 * jax.random.normal(ks[1], (K, 1, in_features), jnp.float32),
        # bottleneck 1x1 conv, split by concat group: (K+1, Cin, Cout)
        "wbot": 0.1 * jax.random.normal(ks[2], (K + 1, in_features, out_features),
                                        jnp.float32),
        "bbot": 0.1 * jax.random.normal(ks[3], (1, out_features), jnp.float32),
        # BatchNorm2d default init
        "gamma": jnp.ones((1, out_features), jnp.float32),
        "beta": jnp.zeros((1, out_features), jnp.float32),
    }


if __name__ == "__main__":
    N, Cin, H, W = 2, 8, 16, 16
    Cout = 16
    bin_sizes = (1, 2, 3)

    key = jax.random.PRNGKey(0)
    kx, kp = jax.random.split(key)
    x = jax.random.normal(kx, (N, Cin, H, W), jnp.float32)
    params = init_params(kp, Cin, Cout, bin_sizes)

    out = pyramid_parser_forward(x, params, bin_sizes)
    out = jax.block_until_ready(out)

    ref = jax.block_until_ready(reference_forward(x, params, bin_sizes))
    assert out.shape == (N, Cout, H, W)
    np.testing.assert_allclose(np.asarray(out), np.asarray(ref),
                               rtol=1e-4, atol=1e-4)
    print("KERNEL_OK")
</pallas_src>

<mosaic_0001>
module attributes {stable_mosaic.version = 11 : i64} {
  func.func @_branch_matmul_kernel(%arg0: i32, %arg1: memref<1x8x256xf32, #tpu.memory_space<vmem>>, %arg2: memref<3x256x9xf32, #tpu.memory_space<vmem>>, %arg3: memref<3x9x256xf32, #tpu.memory_space<vmem>>, %arg4: memref<16x8xf32, #tpu.memory_space<vmem>>, %arg5: memref<3x16x8xf32, #tpu.memory_space<vmem>>, %arg6: memref<16x1xf32, #tpu.memory_space<vmem>>, %arg7: memref<1x16x256xf32, #tpu.memory_space<vmem>>, %arg8: memref<1x16x1xf32, #tpu.memory_space<vmem>>, %arg9: memref<1x16x1xf32, #tpu.memory_space<vmem>>) attributes {dimension_semantics = [#tpu.dimension_semantics<parallel>], iteration_bounds = array<i64: 2>, scalar_prefetch = 0 : i64, scratch_operands = 0 : i64, tpu.core_type = #tpu.core_type<tc>, window_params = [{transform_indices = @transform_0, window_bounds = array<i64: 1, 8, 256>}, {pipeline_mode = #tpu.pipeline_mode<synchronous>, transform_indices = @transform_1, window_bounds = array<i64: 3, 256, 9>}, {pipeline_mode = #tpu.pipeline_mode<synchronous>, transform_indices = @transform_2, window_bounds = array<i64: 3, 9, 256>}, {pipeline_mode = #tpu.pipeline_mode<synchronous>, transform_indices = @transform_3, window_bounds = array<i64: 16, 8>}, {pipeline_mode = #tpu.pipeline_mode<synchronous>, transform_indices = @transform_4, window_bounds = array<i64: 3, 16, 8>}, {pipeline_mode = #tpu.pipeline_mode<synchronous>, transform_indices = @transform_5, window_bounds = array<i64: 16, 1>}, {transform_indices = @transform_6, window_bounds = array<i64: 1, 16, 256>}, {transform_indices = @transform_7, window_bounds = array<i64: 1, 16, 1>}, {transform_indices = @transform_8, window_bounds = array<i64: 1, 16, 1>}]} {
    %c0 = arith.constant 0 : index
    %c0_0 = arith.constant 0 : index
    %c0_1 = arith.constant 0 : index
    %0 = vector.load %arg1[%c0, %c0_0, %c0_1] : memref<1x8x256xf32, #tpu.memory_space<vmem>>, vector<1x8x256xf32>
    %1 = vector.shape_cast %0 : vector<1x8x256xf32> to vector<8x256xf32>
    %c0_2 = arith.constant 0 : index
    %c0_3 = arith.constant 0 : index
    %2 = vector.load %arg4[%c0_2, %c0_3] : memref<16x8xf32, #tpu.memory_space<vmem>>, vector<16x8xf32>
    %cst = arith.constant dense<0.000000e+00> : vector<16x256xf32>
    %3 = tpu.matmul %2, %1, %cst {dimension_numbers = #tpu.dot_dimension_numbers<[1], [0], [0], [1], [0, 0, 1, 1], [], []>} : vector<16x8xf32>, vector<8x256xf32>, vector<16x256xf32> -> vector<16x256xf32>
    %c0_4 = arith.constant 0 : index
    %c0_5 = arith.constant 0 : index
    %c0_6 = arith.constant 0 : index
    %4 = vector.load %arg2[%c0_4, %c0_5, %c0_6] : memref<3x256x9xf32, #tpu.memory_space<vmem>>, vector<1x256x9xf32>
    %5 = vector.shape_cast %4 : vector<1x256x9xf32> to vector<256x9xf32>
    %cst_7 = arith.constant dense<0.000000e+00> : vector<8x9xf32>
    %6 = tpu.matmul %1, %5, %cst_7 {dimension_numbers = #tpu.dot_dimension_numbers<[1], [0], [0], [1], [0, 0, 1, 1], [], []>} : vector<8x256xf32>, vector<256x9xf32>, vector<8x9xf32> -> vector<8x9xf32>
    %c0_8 = arith.constant 0 : index
    %c0_9 = arith.constant 0 : index
    %c0_10 = arith.constant 0 : index
    %7 = vector.load %arg5[%c0_8, %c0_9, %c0_10] : memref<3x16x8xf32, #tpu.memory_space<vmem>>, vector<1x16x8xf32>
    %8 = vector.shape_cast %7 : vector<1x16x8xf32> to vector<16x8xf32>
    %cst_11 = arith.constant dense<0.000000e+00> : vector<16x9xf32>
    %9 = tpu.matmul %8, %6, %cst_11 {dimension_numbers = #tpu.dot_dimension_numbers<[1], [0], [0], [1], [0, 0, 1, 1], [], []>} : vector<16x8xf32>, vector<8x9xf32>, vector<16x9xf32> -> vector<16x9xf32>
    %c0_12 = arith.constant 0 : index
    %c0_13 = arith.constant 0 : index
    %c0_14 = arith.constant 0 : index
    %10 = vector.load %arg3[%c0_12, %c0_13, %c0_14] : memref<3x9x256xf32, #tpu.memory_space<vmem>>, vector<1x9x256xf32>
    %11 = vector.shape_cast %10 : vector<1x9x256xf32> to vector<9x256xf32>
    %cst_15 = arith.constant dense<0.000000e+00> : vector<16x256xf32>
    %12 = tpu.matmul %9, %11, %cst_15 {dimension_numbers = #tpu.dot_dimension_numbers<[1], [0], [0], [1], [0, 0, 1, 1], [], []>} : vector<16x9xf32>, vector<9x256xf32>, vector<16x256xf32> -> vector<16x256xf32>
    %13 = arith.addf %3, %12 : vector<16x256xf32>
    %c1 = arith.constant 1 : index
    %c0_16 = arith.constant 0 : index
    %c0_17 = arith.constant 0 : index
    %14 = vector.load %arg2[%c1, %c0_16, %c0_17] : memref<3x256x9xf32, #tpu.memory_space<vmem>>, vector<1x256x9xf32>
    %15 = vector.shape_cast %14 : vector<1x256x9xf32> to vector<256x9xf32>
    %cst_18 = arith.constant dense<0.000000e+00> : vector<8x9xf32>
    %16 = tpu.matmul %1, %15, %cst_18 {dimension_numbers = #tpu.dot_dimension_numbers<[1], [0], [0], [1], [0, 0, 1, 1], [], []>} : vector<8x256xf32>, vector<256x9xf32>, vector<8x9xf32> -> vector<8x9xf32>
    %c1_19 = arith.constant 1 : index
    %c0_20 = arith.constant 0 : index
    %c0_21 = arith.constant 0 : index
    %17 = vector.load %arg5[%c1_19, %c0_20, %c0_21] : memref<3x16x8xf32, #tpu.memory_space<vmem>>, vector<1x16x8xf32>
    %18 = vector.shape_cast %17 : vector<1x16x8xf32> to vector<16x8xf32>
    %cst_22 = arith.constant dense<0.000000e+00> : vector<16x9xf32>
    %19 = tpu.matmul %18, %16, %cst_22 {dimension_numbers = #tpu.dot_dimension_numbers<[1], [0], [0], [1], [0, 0, 1, 1], [], []>} : vector<16x8xf32>, vector<8x9xf32>, vector<16x9xf32> -> vector<16x9xf32>
    %c1_23 = arith.constant 1 : index
    %c0_24 = arith.constant 0 : index
    %c0_25 = arith.constant 0 : index
    %20 = vector.load %arg3[%c1_23, %c0_24, %c0_25] : memref<3x9x256xf32, #tpu.memory_space<vmem>>, vector<1x9x256xf32>
    %21 = vector.shape_cast %20 : vector<1x9x256xf32> to vector<9x256xf32>
    %cst_26 = arith.constant dense<0.000000e+00> : vector<16x256xf32>
    %22 = tpu.matmul %19, %21, %cst_26 {dimension_numbers = #tpu.dot_dimension_numbers<[1], [0], [0], [1], [0, 0, 1, 1], [], []>} : vector<16x9xf32>, vector<9x256xf32>, vector<16x256xf32> -> vector<16x256xf32>
    %23 = arith.addf %13, %22 : vector<16x256xf32>
    %c2 = arith.constant 2 : index
    %c0_27 = arith.constant 0 : index
    %c0_28 = arith.constant 0 : index
    %24 = vector.load %arg2[%c2, %c0_27, %c0_28] : memref<3x256x9xf32, #tpu.memory_space<vmem>>, vector<1x256x9xf32>
    %25 = vector.shape_cast %24 : vector<1x256x9xf32> to vector<256x9xf32>
    %cst_29 = arith.constant dense<0.000000e+00> : vector<8x9xf32>
    %26 = tpu.matmul %1, %25, %cst_29 {dimension_numbers = #tpu.dot_dimension_numbers<[1], [0], [0], [1], [0, 0, 1, 1], [], []>} : vector<8x256xf32>, vector<256x9xf32>, vector<8x9xf32> -> vector<8x9xf32>
    %c2_30 = arith.constant 2 : index
    %c0_31 = arith.constant 0 : index
    %c0_32 = arith.constant 0 : index
    %27 = vector.load %arg5[%c2_30, %c0_31, %c0_32] : memref<3x16x8xf32, #tpu.memory_space<vmem>>, vector<1x16x8xf32>
    %28 = vector.shape_cast %27 : vector<1x16x8xf32> to vector<16x8xf32>
    %cst_33 = arith.constant dense<0.000000e+00> : vector<16x9xf32>
    %29 = tpu.matmul %28, %26, %cst_33 {dimension_numbers = #tpu.dot_dimension_numbers<[1], [0], [0], [1], [0, 0, 1, 1], [], []>} : vector<16x8xf32>, vector<8x9xf32>, vector<16x9xf32> -> vector<16x9xf32>
    %c2_34 = arith.constant 2 : index
    %c0_35 = arith.constant 0 : index
    %c0_36 = arith.constant 0 : index
    %30 = vector.load %arg3[%c2_34, %c0_35, %c0_36] : memref<3x9x256xf32, #tpu.memory_space<vmem>>, vector<1x9x256xf32>
    %31 = vector.shape_cast %30 : vector<1x9x256xf32> to vector<9x256xf32>
    %cst_37 = arith.constant dense<0.000000e+00> : vector<16x256xf32>
    %32 = tpu.matmul %29, %31, %cst_37 {dimension_numbers = #tpu.dot_dimension_numbers<[1], [0], [0], [1], [0, 0, 1, 1], [], []>} : vector<16x9xf32>, vector<9x256xf32>, vector<16x256xf32> -> vector<16x256xf32>
    %33 = arith.addf %23, %32 : vector<16x256xf32>
    %c0_38 = arith.constant 0 : index
    %c0_39 = arith.constant 0 : index
    %34 = vector.load %arg6[%c0_38, %c0_39] : memref<16x1xf32, #tpu.memory_space<vmem>>, vector<16x1xf32>
    %35 = vector.broadcast %34 : vector<16x1xf32> to vector<16x256xf32>
    %36 = arith.addf %33, %35 : vector<16x256xf32>
    %c0_40 = arith.constant 0 : index
    %c0_41 = arith.constant 0 : index
    %c0_42 = arith.constant 0 : index
    %37 = vector.load %arg7[%c0_40, %c0_41, %c0_42] : memref<1x16x256xf32, #tpu.memory_space<vmem>>, vector<1x16x256xf32>
    %38 = vector.shape_cast %37 : vector<1x16x256xf32> to vector<16x256xf32>
    %39 = vector.shape_cast %36 : vector<16x256xf32> to vector<1x16x256xf32>
    tpu.vector_store %arg7[%c0_40, %c0_41, %c0_42], %39 {strides = array<i32>} : memref<1x16x256xf32, #tpu.memory_space<vmem>>, vector<1x16x256xf32>,
    %cst_43 = arith.constant dense<0.000000e+00> : vector<16xf32>
    %40 = vector.multi_reduction <add>, %36, %cst_43 [1] : vector<16x256xf32> to vector<16xf32>
    %41 = vector.shape_cast %40 : vector<16xf32> to vector<16x1xf32>
    %c0_44 = arith.constant 0 : index
    %c0_45 = arith.constant 0 : index
    %c0_46 = arith.constant 0 : index
    %42 = vector.load %arg8[%c0_44, %c0_45, %c0_46] : memref<1x16x1xf32, #tpu.memory_space<vmem>>, vector<1x16x1xf32>
    %43 = vector.shape_cast %42 : vector<1x16x1xf32> to vector<16x1xf32>
    %44 = vector.shape_cast %41 : vector<16x1xf32> to vector<1x16x1xf32>
    tpu.vector_store %arg8[%c0_44, %c0_45, %c0_46], %44 {strides = array<i32>} : memref<1x16x1xf32, #tpu.memory_space<vmem>>, vector<1x16x1xf32>,
    %45 = arith.mulf %36, %36 : vector<16x256xf32>
    %cst_47 = arith.constant dense<0.000000e+00> : vector<16xf32>
    %46 = vector.multi_reduction <add>, %45, %cst_47 [1] : vector<16x256xf32> to vector<16xf32>
    %47 = vector.shape_cast %46 : vector<16xf32> to vector<16x1xf32>
    %c0_48 = arith.constant 0 : index
    %c0_49 = arith.constant 0 : index
    %c0_50 = arith.constant 0 : index
    %48 = vector.load %arg9[%c0_48, %c0_49, %c0_50] : memref<1x16x1xf32, #tpu.memory_space<vmem>>, vector<1x16x1xf32>
    %49 = vector.shape_cast %48 : vector<1x16x1xf32> to vector<16x1xf32>
    %50 = vector.shape_cast %47 : vector<16x1xf32> to vector<1x16x1xf32>
    tpu.vector_store %arg9[%c0_48, %c0_49, %c0_50], %50 {strides = array<i32>} : memref<1x16x1xf32, #tpu.memory_space<vmem>>, vector<1x16x1xf32>,
    return
  }
  func.func @transform_0(%arg0: i32) -> (i32, i32, i32) {
    %c0_i32 = arith.constant 0 : i32
    %c0_i32_0 = arith.constant 0 : i32
    %c0_i32_1 = arith.constant 0 : i32
    return %arg0, %c0_i32, %c0_i32_0 : i32, i32, i32
  }
  func.func @transform_1(%arg0: i32) -> (i32, i32, i32) {
    %c0_i32 = arith.constant 0 : i32
    %c0_i32_0 = arith.constant 0 : i32
    %c0_i32_1 = arith.constant 0 : i32
    %c0_i32_2 = arith.constant 0 : i32
    return %c0_i32, %c0_i32_0, %c0_i32_1 : i32, i32, i32
  }
  func.func @transform_2(%arg0: i32) -> (i32, i32, i32) {
    %c0_i32 = arith.constant 0 : i32
    %c0_i32_0 = arith.constant 0 : i32
    %c0_i32_1 = arith.constant 0 : i32
    %c0_i32_2 = arith.constant 0 : i32
    return %c0_i32, %c0_i32_0, %c0_i32_1 : i32, i32, i32
  }
  func.func @transform_3(%arg0: i32) -> (i32, i32) {
    %c0_i32 = arith.constant 0 : i32
    %c0_i32_0 = arith.constant 0 : i32
    %c0_i32_1 = arith.constant 0 : i32
    return %c0_i32, %c0_i32_0 : i32, i32
  }
  func.func @transform_4(%arg0: i32) -> (i32, i32, i32) {
    %c0_i32 = arith.constant 0 : i32
    %c0_i32_0 = arith.constant 0 : i32
    %c0_i32_1 = arith.constant 0 : i32
    %c0_i32_2 = arith.constant 0 : i32
    return %c0_i32, %c0_i32_0, %c0_i32_1 : i32, i32, i32
  }
  func.func @transform_5(%arg0: i32) -> (i32, i32) {
    %c0_i32 = arith.constant 0 : i32
    %c0_i32_0 = arith.constant 0 : i32
    %c0_i32_1 = arith.constant 0 : i32
    return %c0_i32, %c0_i32_0 : i32, i32
  }
  func.func @transform_6(%arg0: i32) -> (i32, i32, i32) {
    %c0_i32 = arith.constant 0 : i32
    %c0_i32_0 = arith.constant 0 : i32
    %c0_i32_1 = arith.constant 0 : i32
    return %arg0, %c0_i32, %c0_i32_0 : i32, i32, i32
  }
  func.func @transform_7(%arg0: i32) -> (i32, i32, i32) {
    %c0_i32 = arith.constant 0 : i32
    %c0_i32_0 = arith.constant 0 : i32
    %c0_i32_1 = arith.constant 0 : i32
    return %arg0, %c0_i32, %c0_i32_0 : i32, i32, i32
  }
  func.func @transform_8(%arg0: i32) -> (i32, i32, i32) {
    %c0_i32 = arith.constant 0 : i32
    %c0_i32_0 = arith.constant 0 : i32
    %c0_i32_1 = arith.constant 0 : i32
    return %arg0, %c0_i32, %c0_i32_0 : i32, i32, i32
  }
}

</mosaic_0001>

<bundles_post_ra>
// kernel: tpu_custom_call.1
= control target key start
LH: loop header
LB: loop body
LE: loop exit
PB: predicated region body
PF: predicated region fallthrough
CT: control target
= control target key end

     0   :  { %14 = vsyncpa [#allocation3], 0  ;;  %s2378_s0 = inlined_call_operand.vmem [shape: f32[2,8,256], index: 0, kind: input, shape index: {}]   ;;  %s2379_s1 = inlined_call_operand.vmem [shape: f32[3,256,9], index: 1, kind: input, shape index: {}]   ;;  %s2380_s2 = inlined_call_operand.vmem [shape: f32[3,9,256], index: 2, kind: input, shape index: {}]   ;;  %s2381_s3 = inlined_call_operand.vmem [shape: f32[16,8], index: 3, kind: input, shape index: {}]   ;;  %s2382_s4 = inlined_call_operand.vmem [shape: f32[3,16,8], index: 4, kind: input, shape index: {}]   ;;  %s2383_s5 = inlined_call_operand.vmem [shape: f32[16,1], index: 5, kind: input, shape index: {}]   ;;  %s2384_s6 = inlined_call_operand.hbm [shape: f32[2,16,256], index: 6, kind: output, shape index: {0}]   ;;  %s2385_s7 = inlined_call_operand.vmem [shape: f32[2,16,1], index: 7, kind: output, shape index: {1}]   ;;  %s2386_s8 = inlined_call_operand.vmem [shape: f32[2,16,1], index: 8, kind: output, shape index: {2}]  }
   0x1   :  { %16 = vsyncpa [#allocation3 + $0x1], 0  ;;  %s1851_s27 = smov 0   ;;  %s1853_s28 = smov 0  }
   0x2   :  { %s1855_s29 = smov 0   ;;  %s1857_s30 = smov 0  }
   0x3 LB: > { %s1872_s9 = sadd.s32 4294967295, %s1799_s30   ;;  %s1450_s10 = sadd.s32 4294967294, %s1799_s30   ;;  %s1799_s30 = sphi %s1857_s30, %s2392_s30   ;;  %s1795_s29 = sphi %s1855_s29, %s2391_s29   ;;  %s1791_s28 = sphi %s1853_s28, %s2390_s28   ;;  %s1787_s27 = sphi %s1851_s27, %s2389_s27  }
   0x4   : > { %s1876_s11 = sadd.s32 1, %s1799_s30   ;;  %s160_s12 = sadd.s32 1, %s1795_s29 }
   0x5   : > { %s157_s13 = ssub.s32 %s1799_s30, %s1876_s11  ;;  %p170_p0 = scmp.ne.s32.totalorder %s1795_s29, %s1791_s28 }
   0x6   : > { %p158_p1 = scmp.eq.s32.totalorder %s157_s13, 0  ;;  %p171_p2 = scmp.eq.s32.totalorder %s1872_s9, 1 }
   0x7   : > { %p176_p3 = scmp.ne.s32.totalorder %s1791_s28, %s1787_s27  ;;  %p177_p4 = scmp.eq.s32.totalorder %s1450_s10, 1 }
   0x8   : > { %s1887_s14 = scalar_select %p158_p1, %s1795_s29, %s160_s12  }
   0x9   : > { %p1889_p5 = por %p171_p2, %p170_p0  ;;  %p1893_p6 = por %p177_p4, %p176_p3 }
   0xa   : > { %p1453_p7 = scmp.ge.s32.totalorder %s1799_s30, 1  ;;  %p270_p8 = scmp.lt.s32.totalorder %s1799_s30, 3 }
   0xc   : > { %p271_p9 = pnand %p1453_p7, %p270_p8 }
   0xd   : > { %p314_p10 = scmp.lt.s32.totalorder (!%p271_p9), %s1872_s9, 1  ;;  %s1565_s24 = sshll.u32 (!%p271_p9), %s1872_s9, 9 }
   0xe   : > { %274 = sbr.rel (%p271_p9) target bundleno = 1654 (0x676), region = 44  ;;  %s2326_s12 = scalar_lea.hbm (!%p271_p9), %s2384_s6, %s1565_s24 }
   0xf   : > { %s1803_s18 = smov (!%p271_p9), [#allocation2]  }
  0x10   : > { %s1743_s20 = sshll.u32 (!%p271_p9), %s1803_s18, 4  ;;  %s1744_s20 = int_to_ptr.vmem [resolvable:$false] %s1743_s20 }
  0x13   : > { %v364_v0 = vld [vmem:[%s2379_s1 + $0xf8] sm:$0xff]  ;;  %v363_v2 = vld [vmem:[%s2379_s1 + $0xf0] sm:$0xff]  ;;  %v362_v4 = vld [vmem:[%s2379_s1 + $0xe8] sm:$0xff]  ;;  %s315_s10 = scalar_select %p314_p10, %s1872_s9, 1  ;;  %vm437_vm0 = vcmask 64512   ;;  %vm530_vm1 = vcmask 1040384  }
  0x14   : > { %v348_v1 = vld [vmem:[%s2379_s1 + $0x78] sm:$0xff]  ;;  %1566 = vmatprep.subr.mxu0 %v364_v0  ;;  %v347_v3 = vld [vmem:[%s2379_s1 + $0x70] sm:$0xff]  ;;  %v346_v5 = vld [vmem:[%s2379_s1 + $0x68] sm:$0xff]  ;;  %v1801_v43 = vmov 0.0   ;;  %vm523_vm2 = vcmask 72704  }
  0x15   : > { %1567 = vmatpush3.msra.mxu0 %v348_v1  ;;  %v361_v6 = vld [vmem:[%s2379_s1 + $0xe0] sm:$0xff]  ;;  %s1922_s19 = sshll.u32 %s315_s10, 4  ;;  %v360_v8 = vld [vmem:[%s2379_s1 + $0xd8] sm:$0xff]  ;;  %v359_v10 = vld [vmem:[%s2379_s1 + $0xd0] sm:$0xff] }
  0x16   : > { %1568 = vmatprep.subr.mxu0 %v363_v2  ;;  %v345_v7 = vld [vmem:[%s2379_s1 + $0x60] sm:$0xff]  ;;  %v344_v9 = vld [vmem:[%s2379_s1 + $0x58] sm:$0xff]  ;;  %s1937_s10 = scalar_lea.vmem %s2378_s0, %s1922_s19  ;;  %v343_v11 = vld [vmem:[%s2379_s1 + $0x50] sm:$0xff] }
  0x17   : > { %1569 = vmatpush3.msra.mxu0 %v347_v3  ;;  %v358_v12 = vld [vmem:[%s2379_s1 + $0xc8] sm:$0xff]  ;;  %v357_v15 = vld [vmem:[%s2379_s1 + $0xc0] sm:$0xff]  ;;  %v356_v17 = vld [vmem:[%s2379_s1 + $0xb8] sm:$0xff] }
  0x18   : > { %1570 = vmatprep.subr.mxu0 %v362_v4  ;;  %v1949_v13 = vld [vmem:[%s1937_s10 + $0x8] sm:$0xff]  ;;  %v341_v16 = vld [vmem:[%s2379_s1 + $0x40] sm:$0xff]  ;;  %v340_v18 = vld [vmem:[%s2379_s1 + $0x38] sm:$0xff] }
  0x19   : > { %1571 = vmatpush3.msra.mxu0 %v346_v5  ;;  %v342_v14 = vld [vmem:[%s2379_s1 + $0x48] sm:$0xff]  ;;  %429 = vmatprep.mubr.f32.mxu0 %v1949_v13  ;;  %v355_v19 = vld [vmem:[%s2379_s1 + $0xb0] sm:$0xff]  ;;  %v353_v23 = vld [vmem:[%s2379_s1 + $0xa0] sm:$0xff] }
  0x1a   : > { %1572 = vmatprep.subr.mxu0 %v361_v6  ;;  %v339_v20 = vld [vmem:[%s2379_s1 + $0x30] sm:$0xff]  ;;  %v354_v21 = vld [vmem:[%s2379_s1 + $0xa8] sm:$0xff]  ;;  %v337_v24 = vld [vmem:[%s2379_s1 + $0x20] sm:$0xff] }
  0x1b   : > { %1573 = vmatpush3.msra.mxu0 %v345_v7  ;;  %v338_v22 = vld [vmem:[%s2379_s1 + $0x28] sm:$0xff]  ;;  %v352_v25 = vld [vmem:[%s2379_s1 + $0x98] sm:$0xff]  ;;  %v351_v27 = vld [vmem:[%s2379_s1 + $0x90] sm:$0xff] }
  0x1c   : > { %1574 = vmatprep.subr.mxu0 %v360_v8  ;;  %v336_v26 = vld [vmem:[%s2379_s1 + $0x18] sm:$0xff]  ;;  %v335_v28 = vld [vmem:[%s2379_s1 + $0x10] sm:$0xff]  ;;  %v350_v29 = vld [vmem:[%s2379_s1 + $0x88] sm:$0xff] }
  0x1d   : > { %1575 = vmatpush3.msra.mxu0 %v344_v9  ;;  %v334_v30 = vld [vmem:[%s2379_s1 + $0x8] sm:$0xff]  ;;  %v349_v31 = vld [vmem:[%s2379_s1 + $0x80] sm:$0xff]  ;;  %v522_v39 = vld [vmem:[%s2380_s2 + $0x18] sm:$0x1] }
  0x1e   : > { %1576 = vmatprep.subr.mxu0 %v359_v10  ;;  %v333_v32 = vld [vmem:[%s2379_s1] sm:$0xff]  ;;  %v436_v38 = vld [vmem:[%s2382_s4 + $0x8] sm:$0xff]  ;;  %v521_v40 = vld [vmem:[%s2380_s2 + $0x10] sm:$0x1] }
  0x1f   : > { %1577 = vmatpush3.msra.mxu0 %v343_v11  ;;  %v2010_v33 = vld [vmem:[%s1937_s10] sm:$0xff]  ;;  %v520_v41 = vld [vmem:[%s2380_s2 + $0x8] sm:$0xff]  ;;  %v1500_v46 = vld [vmem:[%s2379_s1 + $0x1f8] sm:$0xff]  ;;  %s297_s10 = sand.u32 1, %s1791_s28  }
  0x20   : > { %1578 = vmatprep.subr.mxu0 %v358_v12  ;;  %v435_v34 = vld [vmem:[%s2382_s4] sm:$0xff]  ;;  %v1484_v48 = vld [vmem:[%s2379_s1 + $0x178] sm:$0xff]  ;;  %v1499_v49 = vld [vmem:[%s2379_s1 + $0x1f0] sm:$0xff]  ;;  %s1454_s21 = sshll.u32 %s297_s10, 5  ;;  %s2330_s13 = scalar_lea.sflag [#allocation3], %s297_s10 }
  0x21   : > { %1579 = vmatpush3.msra.mxu0 %v342_v14  ;;  %1682 = vmatprep.mubr.msk.f32.mxu1 %vm437_vm0, %v435_v34  ;;  %v519_v42 = vld [vmem:[%s2380_s2] sm:$0xff]  ;;  %v1483_v50 = vld [vmem:[%s2379_s1 + $0x170] sm:$0xff]  ;;  %v1498_v51 = vld [vmem:[%s2379_s1 + $0x1e8] sm:$0xff]  ;;  %s299_s22 = scalar_lea.vmem [#allocation2], %s1454_s21  ;;  %s1745_s21 = scalar_lea.vmem %s1744_s20, 1024 }
  0x22   : > { %1580 = vmatprep.subr.mxu0 %v357_v15  ;;  %v331_v47 = vld [vmem:[%s2381_s3] sm:$0xff]  ;;  %v332_v52 = vld [vmem:[%s2381_s3 + $0x8] sm:$0xff]  ;;  %v1496_v56 = vld [vmem:[%s2379_s1 + $0x1d8] sm:$0xff]  ;;  %s1332_s23 = sshll.u32 %s299_s22, 4  ;;  %s2320_s23 = int_to_ptr.vmem [resolvable:$true] %s1332_s23 }
  0x23   : > { %1581 = vmatpush3.msra.mxu0 %v341_v16  ;;  %v1482_v53 = vld [vmem:[%s2379_s1 + $0x168] sm:$0xff]  ;;  %v1497_v54 = vld [vmem:[%s2379_s1 + $0x1e0] sm:$0xff]  ;;  %v1480_v57 = vld [vmem:[%s2379_s1 + $0x158] sm:$0xff]  ;;  %s1739_s17 = scalar_lea.vmem %s2320_s23, 512  ;;  %p1746_p0 = scmp.lt.s32.totalorder %s2320_s23, %s1744_s20 }
  0x24   : > { %1582 = vmatprep.subr.mxu0 %v356_v17  ;;  %v1481_v55 = vld [vmem:[%s2379_s1 + $0x160] sm:$0xff]  ;;  %v1495_v58 = vld [vmem:[%s2379_s1 + $0x1d0] sm:$0xff]  ;;  %v1494_v60 = vld [vmem:[%s2379_s1 + $0x1c8] sm:$0xff]  ;;  %p1740_p11 = scmp.ne.s32.totalorder %s2320_s23, %s1739_s17  ;;  %p1747_p1 = scmp.lt.s32.totalorder %s1745_s21, %s1739_s17 }
  0x25   : > { %1583 = vmatpush3.msra.mxu0 %v340_v18  ;;  %v1479_v59 = vld [vmem:[%s2379_s1 + $0x150] sm:$0xff]  ;;  %v1478_v61 = vld [vmem:[%s2379_s1 + $0x148] sm:$0xff]  ;;  %v1493_v62 = vld [vmem:[%s2379_s1 + $0x1c0] sm:$0xff] }
  0x26   : > { %1584 = vmatprep.subr.mxu0 %v355_v19  ;;  %v1477_v63 = vld [vmem:[%s2379_s1 + $0x140] sm:$0xff]  ;;  %v1492_v0 = vld [vmem:[%s2379_s1 + $0x1b8] sm:$0xff]  ;;  %v1491_v2 = vld [vmem:[%s2379_s1 + $0x1b0] sm:$0xff]  ;;  %p1741_p12 = pnand %p1740_p11, %p1889_p5  ;;  %p1748_p2 = por %p1747_p1, %p1746_p0 }
  0x27   : > { %1585 = vmatpush3.msra.mxu0 %v339_v20  ;;  %v1476_v1 = vld [vmem:[%s2379_s1 + $0x138] sm:$0xff]  ;;  %v1475_v3 = vld [vmem:[%s2379_s1 + $0x130] sm:$0xff]  ;;  %v1490_v4 = vld [vmem:[%s2379_s1 + $0x1a8] sm:$0xff] }
  0x28   : > { %1586 = vmatprep.subr.mxu0 %v354_v21  ;;  %v1474_v5 = vld [vmem:[%s2379_s1 + $0x128] sm:$0xff]  ;;  %v1489_v6 = vld [vmem:[%s2379_s1 + $0x1a0] sm:$0xff]  ;;  %v1488_v8 = vld [vmem:[%s2379_s1 + $0x198] sm:$0xff]  ;;  %p1742_p13 = pneg %p1741_p12 }
  0x29   : > { %1587 = vmatpush3.msra.mxu0 %v338_v22  ;;  %v1473_v7 = vld [vmem:[%s2379_s1 + $0x120] sm:$0xff]  ;;  %v1472_v9 = vld [vmem:[%s2379_s1 + $0x118] sm:$0xff]  ;;  %v1487_v10 = vld [vmem:[%s2379_s1 + $0x190] sm:$0xff] }
  0x2a   : > { %1588 = vmatprep.subr.mxu0 %v353_v23  ;;  %v1471_v11 = vld [vmem:[%s2379_s1 + $0x110] sm:$0xff]  ;;  %v1486_v12 = vld [vmem:[%s2379_s1 + $0x188] sm:$0xff]  ;;  %v1485_v15 = vld [vmem:[%s2379_s1 + $0x180] sm:$0xff]  ;;  %p1749_p3 = pnand %p1748_p2, %p1742_p13 }
  0x2b   : > { %1589 = vmatpush3.msra.mxu0 %v337_v24  ;;  %v1470_v14 = vld [vmem:[%s2379_s1 + $0x108] sm:$0xff]  ;;  %v1469_v16 = vld [vmem:[%s2379_s1 + $0x100] sm:$0xff]  ;;  %v1501_v17 = vld [vmem:[%s2382_s4 + $0x10] sm:$0xff] }
  0x2c   : > { %1590 = vmatprep.subr.mxu0 %v352_v25  ;;  %v1508_v18 = vld [vmem:[%s2380_s2 + $0x38] sm:$0x1]  ;;  %v1507_v19 = vld [vmem:[%s2380_s2 + $0x30] sm:$0x1] }
  0x2d   : > { %1591 = vmatpush3.msra.mxu0 %v336_v26 }
  0x2e   : > { %1592 = vmatprep.subr.mxu0 %v351_v27 }
  0x2f   : > { %1593 = vmatpush3.msra.mxu0 %v335_v28 }
  0x30   : > { %1594 = vmatprep.subr.mxu0 %v350_v29 }
  0x31   : > { %1595 = vmatpush3.msra.mxu0 %v334_v30 }
  0x32   : > { %1596 = vmatprep.subr.mxu0 %v349_v31 }
  0x33   : > { %1597 = vmatpush3.msra.mxu0 %v333_v32 }
  0x34   : > { %430 = vmatmul.mubr.f32.vlgmr.msra.gmra.mxu0 %v2010_v33  ;;  %1509 = vmatprep.subr.msk.mxu0 %vm530_vm1, %v1508_v18 }
  0x35   : > { %965 = vmatprep.mubr.f32.mxu0 %v1801_v43  ;;  %1510 = vmatpush1.msk.msra.mxu0 %vm530_vm1, %v1507_v19 }
  0xf4   : > { %v1598_v35 = vpop.f32.mrf.mxu0 }
  0xf6   : > { %v1599_v36 = vpop.f32.mrf.mxu0 }
  0xf7   : > { %v1600_v37 = vadd.f32 %v1599_v36, %v1598_v35  ;;  %v1502_v36 = vld [vmem:[%s2382_s4 + $0x18] sm:$0xff] }
  0xf9   : > { %1680 = vmatprep.subr.mxu1 %v1600_v37 }
  0xfa   : > { %1681 = vmatpush3.msra.mxu1 %v1600_v37  ;;  %v1506_v37 = vld [vmem:[%s2380_s2 + $0x28] sm:$0xff] }
  0xfb   : > { %1683 = vmatmul.mubr.msk.f32.vlgmr.msra.gmra.mxu1 %vm437_vm0, %v436_v38  ;;  %1463 = vmatprep.subr.msk.mxu1 %vm530_vm1, %v522_v39  ;;  %v1505_v38 = vld [vmem:[%s2380_s2 + $0x20] sm:$0xff]  ;;  %v1544_v39 = vld [vmem:[%s2379_s1 + $0x2f8] sm:$0xff] }
  0xfc   : > { %1464 = vmatpush1.msk.msra.mxu1 %vm530_vm1, %v521_v40  ;;  %601 = vmatprep.mubr.f32.mxu1 %v1801_v43 }
  0xfd   : > { %567 = vmatprep.subr.mxu1 %v520_v41  ;;  %931 = vmatprep.subr.mxu0 %v1506_v37  ;;  %v1528_v41 = vld [vmem:[%s2379_s1 + $0x278] sm:$0xff] }
  0xfe   : > { %568 = vmatpush1.msra.mxu1 %v519_v42  ;;  %932 = vmatpush1.msra.mxu0 %v1505_v38 }
  0xff   : > { %650 = vmatprep.subr.mxu1 %v1949_v13  ;;  %1642 = vmatprep.subr.mxu0 %v1544_v39 }
 0x1bb   : > { %v1684_v44 = vpop.f32.mrf.mxu1 }
 0x1bd   : > { %v510_v45 = vpop.f32.mrf.mxu1 }
 0x1be   : > { %1465 = vmatmul.mubr.msk.f32.vlgmr.msra.gmra.mxu1 %vm523_vm2, %v510_v45  ;;  %v1527_v45 = vld [vmem:[%s2379_s1 + $0x270] sm:$0xff] }
 0x1bf   : > { %607 = vmatprep.mubr.f32.mxu1 %v1801_v43  ;;  %651 = vmatpush1.msra.mxu1 %v2010_v33 }
 0x1c0   : > { %1604 = vmatprep.subr.mxu1 %v1500_v46  ;;  %v1542_v46 = vld [vmem:[%s2379_s1 + $0x2e8] sm:$0xff] }
 0x1c2   : > { %1466 = vmatmul.mubr.msk.f32.gmra.mxu1 %vm523_vm2, %v1684_v44  ;;  %v1543_v44 = vld [vmem:[%s2379_s1 + $0x2f0] sm:$0xff] }
 0x1c3   : > { %684 = vmatprep.mubr.f32.mxu1 %v1801_v43 }
 0x1c6   : > { %1467 = vmatmul.mubr.msk.f32.vlgmr.msra.gmra.mxu1 %vm437_vm0, %v331_v47  ;;  %v1526_v47 = vld [vmem:[%s2379_s1 + $0x268] sm:$0xff] }
 0x1c7   : > { %1605 = vmatpush3.msra.mxu1 %v1484_v48  ;;  %690 = vmatprep.mubr.f32.mxu1 %v1801_v43  ;;  %v1541_v48 = vld [vmem:[%s2379_s1 + $0x2e0] sm:$0xff] }
 0x1c8   : > { %1606 = vmatprep.subr.mxu1 %v1499_v49  ;;  %v1525_v49 = vld [vmem:[%s2379_s1 + $0x260] sm:$0xff] }
 0x1c9   : > { %1607 = vmatpush3.msra.mxu1 %v1483_v50  ;;  %v1540_v50 = vld [vmem:[%s2379_s1 + $0x2d8] sm:$0xff] }
 0x1ca   : > { %1608 = vmatprep.subr.mxu1 %v1498_v51  ;;  %1468 = vmatmul.mubr.msk.f32.gmra.mxu1 %vm437_vm0, %v332_v52  ;;  %v1524_v51 = vld [vmem:[%s2379_s1 + $0x258] sm:$0xff]  ;;  %v1539_v52 = vld [vmem:[%s2379_s1 + $0x2d0] sm:$0xff] }
 0x1cb   : > { %1609 = vmatpush3.msra.mxu1 %v1482_v53  ;;  %794 = vmatprep.mubr.f32.mxu1 %v1949_v13  ;;  %v1523_v53 = vld [vmem:[%s2379_s1 + $0x250] sm:$0xff] }
 0x1cc   : > { %1610 = vmatprep.subr.mxu1 %v1497_v54  ;;  %v1522_v54 = vld [vmem:[%s2379_s1 + $0x248] sm:$0xff] }
 0x1cd   : > { %1611 = vmatpush3.msra.mxu1 %v1481_v55  ;;  %v1537_v55 = vld [vmem:[%s2379_s1 + $0x2c0] sm:$0xff] }
 0x1ce   : > { %1612 = vmatprep.subr.mxu1 %v1496_v56  ;;  %v1521_v56 = vld [vmem:[%s2379_s1 + $0x240] sm:$0xff] }
 0x1cf   : > { %1613 = vmatpush3.msra.mxu1 %v1480_v57  ;;  %v1536_v57 = vld [vmem:[%s2379_s1 + $0x2b8] sm:$0xff] }
 0x1d0   : > { %1614 = vmatprep.subr.mxu1 %v1495_v58  ;;  %v1520_v58 = vld [vmem:[%s2379_s1 + $0x238] sm:$0xff] }
 0x1d1   : > { %1615 = vmatpush3.msra.mxu1 %v1479_v59  ;;  %v1535_v59 = vld [vmem:[%s2379_s1 + $0x2b0] sm:$0xff] }
 0x1d2   : > { %1616 = vmatprep.subr.mxu1 %v1494_v60  ;;  %v1519_v60 = vld [vmem:[%s2379_s1 + $0x230] sm:$0xff] }
 0x1d3   : > { %1617 = vmatpush3.msra.mxu1 %v1478_v61  ;;  %v1534_v61 = vld [vmem:[%s2379_s1 + $0x2a8] sm:$0xff] }
 0x1d4   : > { %1618 = vmatprep.subr.mxu1 %v1493_v62  ;;  %v1518_v62 = vld [vmem:[%s2379_s1 + $0x228] sm:$0xff] }
 0x1d5   : > { %1619 = vmatpush3.msra.mxu1 %v1477_v63  ;;  %v1533_v63 = vld [vmem:[%s2379_s1 + $0x2a0] sm:$0xff] }
 0x1d6   : > { %1620 = vmatprep.subr.mxu1 %v1492_v0  ;;  %v1517_v0 = vld [vmem:[%s2379_s1 + $0x220] sm:$0xff] }
 0x1d7   : > { %1621 = vmatpush3.msra.mxu1 %v1476_v1  ;;  %v1532_v1 = vld [vmem:[%s2379_s1 + $0x298] sm:$0xff] }
 0x1d8   : > { %1622 = vmatprep.subr.mxu1 %v1491_v2  ;;  %v1516_v2 = vld [vmem:[%s2379_s1 + $0x218] sm:$0xff] }
 0x1d9   : > { %1623 = vmatpush3.msra.mxu1 %v1475_v3  ;;  %v1531_v3 = vld [vmem:[%s2379_s1 + $0x290] sm:$0xff] }
 0x1da   : > { %1624 = vmatprep.subr.mxu1 %v1490_v4  ;;  %v1515_v4 = vld [vmem:[%s2379_s1 + $0x210] sm:$0xff] }
 0x1db   : > { %1625 = vmatpush3.msra.mxu1 %v1474_v5  ;;  %v1530_v5 = vld [vmem:[%s2379_s1 + $0x288] sm:$0xff] }
 0x1dc   : > { %1626 = vmatprep.subr.mxu1 %v1489_v6  ;;  %v1514_v6 = vld [vmem:[%s2379_s1 + $0x208] sm:$0xff] }
 0x1dd   : > { %1627 = vmatpush3.msra.mxu1 %v1473_v7  ;;  %v1529_v7 = vld [vmem:[%s2379_s1 + $0x280] sm:$0xff] }
 0x1de   : > { %1628 = vmatprep.subr.mxu1 %v1488_v8  ;;  %v1513_v8 = vld [vmem:[%s2379_s1 + $0x200] sm:$0xff] }
 0x1df   : > { %1629 = vmatpush3.msra.mxu1 %v1472_v9  ;;  %v1545_v9 = vld [vmem:[%s2382_s4 + $0x20] sm:$0xff] }
 0x1e0   : > { %1630 = vmatprep.subr.mxu1 %v1487_v10 }
 0x1e1   : > { %1631 = vmatpush3.msra.mxu1 %v1471_v11 }
 0x1e2   : > { %1632 = vmatprep.subr.mxu1 %v1486_v12 }
 0x1e3   : > { %1633 = vmatpush3.msra.mxu1 %v1470_v14 }
 0x1e4   : > { %1634 = vmatprep.subr.mxu1 %v1485_v15 }
 0x1e5   : > { %1635 = vmatpush3.msra.mxu1 %v1469_v16 }
 0x1e6   : > { %795 = vmatmul.mubr.f32.vlgmr.msra.gmra.mxu1 %v2010_v33 }
 0x1e7   : > { %1687 = vmatprep.mubr.msk.f32.mxu1 %vm437_vm0, %v1501_v17 }
 0x27e   : > { %v603_v20 = vpop.f32.mrf.mxu1 }
 0x280   : > { %v605_v21 = vpop.f32.mrf.mxu1 }
 0x282   : > { %v609_v22 = vpop.f32.mrf.mxu1 }
 0x284   : > { %v611_v23 = vpop.f32.mrf.mxu1 }
 0x286   : > { %v686_v24 = vpop.f32.mrf.mxu1 }
 0x287   : > { %v2162_v25 = vadd.f32 %v686_v24, %v603_v20  ;;  %v1550_v24 = vld [vmem:[%s2380_s2 + $0x48] sm:$0xff] }
 0x288   : > { %v688_v26 = vpop.f32.mrf.mxu1 }
 0x289   : > { %v2164_v27 = vadd.f32 %v688_v26, %v605_v21  ;;  %v1546_v21 = vld [vmem:[%s2382_s4 + $0x28] sm:$0xff]  ;;  %v1267_v26 = vld [vmem:[%s2383_s5] sm:$0xff] }
 0x28a   : > { %v692_v28 = vpop.f32.mrf.mxu1 }
 0x28b   : > { %v2166_v29 = vadd.f32 %v692_v28, %v609_v22  ;;  %v1552_v22 = vld [vmem:[%s2380_s2 + $0x58] sm:$0x1]  ;;  %v1268_v28 = vld [vmem:[%s2383_s5 + $0x8] sm:$0xff] }
 0x28c   : > { %v694_v30 = vpop.f32.mrf.mxu1 }
 0x28d   : > { %v2168_v31 = vadd.f32 %v694_v30, %v611_v23  ;;  %v1551_v23 = vld [vmem:[%s2380_s2 + $0x50] sm:$0x1] }
 0x2a6   : > { %v1636_v32 = vpop.f32.mrf.mxu1 }
 0x2a8   : > { %v1637_v34 = vpop.f32.mrf.mxu1 }
 0x2a9   : > { %v1638_v35 = vadd.f32 %v1637_v34, %v1636_v32 }
 0x2ab   : > { %1685 = vmatprep.subr.mxu1 %v1638_v35 }
 0x2ac   : > { %1686 = vmatpush3.msra.mxu1 %v1638_v35 }
 0x2ad   : > { %1688 = vmatmul.mubr.msk.f32.vlgmr.msra.gmra.mxu1 %vm437_vm0, %v1502_v36 }
 0x2ae   : > { %1692 = vmatprep.mubr.msk.f32.mxu1 %vm437_vm0, %v1545_v9 }
 0x36d   : > { %v1689_v40 = vpop.f32.mrf.mxu1 }
 0x36f   : > { %v875_v42 = vpop.f32.mrf.mxu1 }
 0x370   : > { %1511 = vmatmul.mubr.msk.f32.vlgmr.msra.gmra.mxu0 %vm523_vm2, %v875_v42 }
 0x371   : > { %1643 = vmatpush3.msra.mxu0 %v1528_v41  ;;  %971 = vmatprep.mubr.f32.mxu0 %v1801_v43 }
 0x372   : > { %1644 = vmatprep.subr.mxu0 %v1543_v44 }
 0x373   : > { %1645 = vmatpush3.msra.mxu0 %v1527_v45 }
 0x374   : > { %1646 = vmatprep.subr.mxu0 %v1542_v46  ;;  %1512 = vmatmul.mubr.msk.f32.gmra.mxu0 %vm523_vm2, %v1689_v40 }
 0x375   : > { %1647 = vmatpush3.msra.mxu0 %v1526_v47  ;;  %1079 = vmatprep.mubr.f32.mxu0 %v1949_v13  ;;  %v1538_v13 = vld [vmem:[%s2379_s1 + $0x2c8] sm:$0xff] }
 0x376   : > { %1648 = vmatprep.subr.mxu0 %v1541_v48 }
 0x377   : > { %1649 = vmatpush3.msra.mxu0 %v1525_v49 }
 0x378   : > { %1650 = vmatprep.subr.mxu0 %v1540_v50 }
 0x379   : > { %1651 = vmatpush3.msra.mxu0 %v1524_v51 }
 0x37a   : > { %1652 = vmatprep.subr.mxu0 %v1539_v52 }
 0x37b   : > { %1653 = vmatpush3.msra.mxu0 %v1523_v53 }
 0x37c   : > { %1654 = vmatprep.subr.mxu0 %v1538_v13 }
 0x37d   : > { %1655 = vmatpush3.msra.mxu0 %v1522_v54 }
 0x37e   : > { %1656 = vmatprep.subr.mxu0 %v1537_v55 }
 0x37f   : > { %1657 = vmatpush3.msra.mxu0 %v1521_v56 }
 0x380   : > { %1658 = vmatprep.subr.mxu0 %v1536_v57 }
 0x381   : > { %1659 = vmatpush3.msra.mxu0 %v1520_v58 }
 0x382   : > { %1660 = vmatprep.subr.mxu0 %v1535_v59 }
 0x383   : > { %1661 = vmatpush3.msra.mxu0 %v1519_v60 }
 0x384   : > { %1662 = vmatprep.subr.mxu0 %v1534_v61 }
 0x385   : > { %1663 = vmatpush3.msra.mxu0 %v1518_v62 }
 0x386   : > { %1664 = vmatprep.subr.mxu0 %v1533_v63 }
 0x387   : > { %1665 = vmatpush3.msra.mxu0 %v1517_v0 }
 0x388   : > { %1666 = vmatprep.subr.mxu0 %v1532_v1 }
 0x389   : > { %1667 = vmatpush3.msra.mxu0 %v1516_v2 }
 0x38a   : > { %1668 = vmatprep.subr.mxu0 %v1531_v3 }
 0x38b   : > { %1669 = vmatpush3.msra.mxu0 %v1515_v4 }
 0x38c   : > { %1670 = vmatprep.subr.mxu0 %v1530_v5 }
 0x38d   : > { %1671 = vmatpush3.msra.mxu0 %v1514_v6 }
 0x38e   : > { %1672 = vmatprep.subr.mxu0 %v1529_v7 }
 0x38f   : > { %1673 = vmatpush3.msra.mxu0 %v1513_v8 }
 0x390   : > { %1080 = vmatmul.mubr.f32.vlgmr.msra.gmra.mxu0 %v2010_v33 }
 0x430   : > { %v967_v10 = vpop.f32.mrf.mxu0 }
 0x431   : > { %v978_v11 = vadd.f32 %v967_v10, %v2162_v25  ;;  %v1549_v25 = vld [vmem:[%s2380_s2 + $0x40] sm:$0xff] }
 0x432   : > { %v969_v12 = vpop.f32.mrf.mxu0 }
 0x433   : > { %v979_v14 = vadd.f32 %v969_v12, %v2164_v27  ;;  %v1802_v27 = vmov 0  }
 0x434   : > { %v973_v15 = vpop.f32.mrf.mxu0  ;;  %1738 = vset.pattern.permute.xlu0 %v1802_v27 }
 0x435   : > { %v980_v16 = vadd.f32 %v973_v15, %v2166_v29  ;;  %1271 = vperm.xlu0 %1738, %v1267_v26  }
 0x436   : > { %v975_v17 = vpop.f32.mrf.mxu0 }
 0x437   : > { %v981_v18 = vadd.f32 %v975_v17, %v2168_v31 }
 0x439   : > { %1276 = vperm.xlu0 %1738, %v1268_v28  }
 0x450   : > { %v1674_v19 = vpop.f32.mrf.mxu0 }
 0x452   : > { %v1675_v33 = vpop.f32.mrf.mxu0 }
 0x453   : > { %v1676_v20 = vadd.f32 %v1675_v33, %v1674_v19 }
 0x455   : > { %1690 = vmatprep.subr.mxu1 %v1676_v20 }
 0x456   : > { %1691 = vmatpush3.msra.mxu1 %v1676_v20 }
 0x457   : > { %1693 = vmatmul.mubr.msk.f32.vlgmr.msra.gmra.mxu1 %vm437_vm0, %v1546_v21  ;;  %1553 = vmatprep.subr.msk.mxu1 %vm530_vm1, %v1552_v22 }
 0x458   : > { %1250 = vmatprep.mubr.f32.mxu1 %v1801_v43  ;;  %1554 = vmatpush1.msk.msra.mxu1 %vm530_vm1, %v1551_v23 }
 0x459   : > { %1216 = vmatprep.subr.mxu1 %v1550_v24 }
 0x45a   : > { %1217 = vmatpush1.msra.mxu1 %v1549_v25 }
 0x4b0   : > { %v1272_v32 = vpop.permute.xlu0 %1271 }
 0x4b4   : > { %v1277_v41 = vpop.permute.xlu0 %1276 }
 0x517   : > { %v1694_v29 = vpop.f32.mrf.mxu1 }
 0x519   : > { %v1160_v30 = vpop.f32.mrf.mxu1 }
 0x51a   : > { %1555 = vmatmul.mubr.msk.f32.vlgmr.msra.gmra.mxu1 %vm523_vm2, %v1160_v30 }
 0x51b   : > { %1256 = vmatprep.mubr.f32.mxu1 %v1801_v43 }
 0x51e   : > { %1556 = vmatmul.mubr.msk.f32.gmra.mxu1 %vm523_vm2, %v1694_v29 }
 0x5da   : > { %v1252_v31 = vpop.f32.mrf.mxu1 }
 0x5db   : > { %v1263_v34 = vadd.f32 %v1252_v31, %v978_v11 }
 0x5dc   : > { %v1254_v35 = vpop.f32.mrf.mxu1 }
 0x5dd   : > { %v1279_v36 = vadd.f32 %v1272_v32, %v1263_v34  ;;  %v1264_v37 = vadd.f32 %v1254_v35, %v979_v14 }
 0x5de   : > { %v1258_v38 = vpop.f32.mrf.mxu1 }
 0x5df   : > { %1283 = vst [vmem:[%s299_s22] sm:$0xff] %v1279_v36  ;;  %v1280_v39 = vadd.f32 %v1272_v32, %v1264_v37  ;;  %v1265_v40 = vadd.f32 %v1258_v38, %v980_v16  ;;  %v1296_v44 = vmul.f32 %v1279_v36, %v1279_v36 }
 0x5e0   : > { %v1260_v42 = vpop.f32.mrf.mxu1 }
 0x5e1   : > { %1284 = vst [vmem:[%s299_s22 + $0x8] sm:$0xff] %v1280_v39  ;;  %v1281_v43 = vadd.f32 %v1277_v41, %v1265_v40  ;;  %v1266_v45 = vadd.f32 %v1260_v42, %v981_v18  ;;  %v1287_v46 = vadd.f32 %v1280_v39, %v1279_v36  ;;  %v1297_v47 = vmul.f32 %v1280_v39, %v1280_v39 }
 0x5e3   : > { %1285 = vst [vmem:[%s299_s22 + $0x10] sm:$0xff] %v1281_v43  ;;  %v1282_v48 = vadd.f32 %v1277_v41, %v1266_v45  ;;  %1288 = vadd.xlane.f32.xlu1 %v1287_v46  ;;  %v1300_v49 = vadd.f32 %v1297_v47, %v1296_v44  ;;  %v1298_v51 = vmul.f32 %v1281_v43, %v1281_v43 }
 0x5e5   : > { %1286 = vst [vmem:[%s299_s22 + $0x18] sm:$0xff] %v1282_v48  ;;  %1301 = vadd.xlane.f32.xlu0 %v1300_v49  ;;  %v1290_v50 = vadd.f32 %v1282_v48, %v1281_v43  ;;  %v1299_v52 = vmul.f32 %v1282_v48, %v1282_v48 }
 0x5e7   : > { %1291 = vadd.xlane.f32.xlu1 %v1290_v50  ;;  %v1303_v53 = vadd.f32 %v1299_v52, %v1298_v51 }
 0x5eb   : > { %1304 = vadd.xlane.f32.xlu1 %v1303_v53 }
 0x5ec   : > { %1752 = shalt.err (!%p1749_p3)
}
 0x5ed   : > { %s1753_s9 = scalar_lea.hbm %s2326_s12, 512  ;;  %s1757_s24 = scalar_lea.hbm %s2384_s6, 1024 }
 0x5ee   : > { %p1754_p4 = scmp.ne.s32.totalorder %s2326_s12, %s1753_s9  ;;  %p1758_p9 = scmp.lt.s32.totalorder %s2326_s12, %s2384_s6 }
 0x5ef   : > { %p1759_p10 = scmp.lt.s32.totalorder %s1757_s24, %s1753_s9 }
 0x5f0   : > { %p1755_p7 = pnand %p1754_p4, %p1889_p5 }
 0x5f1   : > { %p1760_p11 = por %p1759_p10, %p1758_p9 }
 0x5f2   : > { %p1756_p8 = pneg %p1755_p7 }
 0x5f4   : > { %p1761_p12 = pnand %p1760_p11, %p1756_p8 }
 0x5f6   : > { %1764 = shalt.err (!%p1761_p12)
}
 0x5f7   : > { %s1804_s17 = smov 256   ;;  %s1805_s18 = smov 16   ;;  %vm1293_vm3 = vcmask 7168  }
 0x5f8   : > { %1695 = dma.vmem_to_hbm [thread:$0]  (%p1889_p5), %s2320_s23, 512, %s2326_s12, %s2330_s13, %s1804_s17, %s1804_s17, %s1805_s18  }
 0x5f9   : > { %s323_s10 = scalar_lea.vmem %s2385_s7, %s1922_s19  ;;  %s328_s24 = scalar_lea.vmem %s2386_s8, %s1922_s19 }
 0x66c   : > { %v1289_v13 = vpop.xlane.xlu1 %1288 }
 0x66d   : > { %1294 = vst.msk [vmem:[%s323_s10] sm:$0xff] %vm1293_vm3, %v1289_v13 }
 0x66e   : > { %v1302_v54 = vpop.xlane.xlu0 %1301 }
 0x66f   : > { %1306 = vst.msk [vmem:[%s328_s24] sm:$0xff] %vm1293_vm3, %v1302_v54 }
 0x670   : > { %v1292_v55 = vpop.xlane.xlu1 %1291 }
 0x671   : > { %1295 = vst.msk [vmem:[%s323_s10 + $0x8] sm:$0xff] %vm1293_vm3, %v1292_v55 }
 0x674   : > { %v1305_v56 = vpop.xlane.xlu1 %1304 }
 0x675   : > { %1307 = vst.msk [vmem:[%s328_s24 + $0x8] sm:$0xff] %vm1293_vm3, %v1305_v56 }
 0x676 PF: > { %p1701_p5 = scmp.ge.s32.totalorder %s1799_s30, 2  ;;  %s1353_s15 = sand.u32 1, %s1787_s27  }
 0x677   : > { %s1354_s23 = scalar_lea.sflag [#allocation3], %s1353_s15 }
 0x678   : > { %p1698_p13 = pnand %p1701_p5, %p1893_p6 }
 0x67a   : > { %p1699_p0 = pneg %p1698_p13 }
 0x67c   : > { %1782 = dma.done.wait (%p1699_p0), %s1354_s23, 512  }
 0x67d   : > { %1784 = vsyncadd (%p1699_p0), %s1354_s23, 4294966784  ;;  %p19_p1 = scmp.ge.s32.totalorder %s1876_s11, 4   ;;  %s2389_s27 = smov %s1791_s28 }
 0x67e   : > { %s2390_s28 = smov %s1795_s29  ;;  %s2391_s29 = smov %s1887_s14 }
 0x67f   : > { %s2392_s30 = smov %s1876_s11  ;;  %21 = sbr.rel (!%p19_p1) target bundleno = 3 (0x3), region = 109 }
 0x684   :  { %1375 = vsyncpa [#allocation3], 1 }
 0x685   :  { %1377 = vsyncpa [#allocation3 + $0x1], 1 }

</bundles_post_ra>
